<compile_context>
chip_gen: v5e
topology: v5e:2x2
jax: 0.10.0
libtpu: 0.0.40
codegen_flags: <defaults>
</compile_context>

<pallas_src>
import jax
import jax.numpy as jnp
import numpy as np
from jax.experimental import pallas as pl
from jax.experimental.pallas import tpu as pltpu

# ------------------------- small, module-consistent shapes -------------------------
BATCH = 2
NUM_STEPS = 8
VOCAB = 16
HIDDEN = 32
LANE = 128  # lane-dense padding for the dense-head output


def rnn_kernel(idx_ref, w_ihb_ref, w_hh_t_ref, w_d_t_ref, b_d_ref,
               out_ref, y_ref, x_scr):
    """Single-invocation RNN forward.

    idx_ref   : SMEM (B, T) int32  -- token indices (scalar prefetch)
    w_ihb_ref : VMEM (V, H)        -- W_ih^T with (b_ih + b_hh) folded into every row
    w_hh_t_ref: VMEM (H, H)        -- W_hh^T
    w_d_t_ref : VMEM (H, LANE)     -- W_dense^T zero-padded to 128 lanes
    b_d_ref   : VMEM (1, LANE)     -- dense bias zero-padded to 128 lanes
    out_ref   : VMEM (T*B, LANE)   -- logits (lane-padded)
    y_ref     : VMEM (T*B, H)      -- all hidden states (row order == Y.view(-1, H));
                                      wrapper slices the last B rows for the final state
    x_scr     : VMEM (T*B, H)      -- scratch: pre-gathered input projections
    """
    B, T = idx_ref.shape

    # ---- Phase 1: h-independent input projections, hoisted out of the recurrence.
    # x_t is one-hot, so x_t @ W_ih^T + (b_ih + b_hh) == gather of row idx[b, t]
    # (biases pre-folded into every row). These 16 gathers have no data dependence
    # on h, so they pipeline freely in the vld/vst slots before the serial loop.
    for t in range(T):
        for b in range(B):
            x_scr[pl.ds(t * B + b, 1), :] = w_ihb_ref[pl.ds(idx_ref[b, t], 1), :]

    # Hoist the constant recurrent weight load out of the loop.
    w_hh_t = w_hh_t_ref[...]                                     # (H, H)

    # ---- Phase 2: recurrence, fully unrolled over the static, small T.
    # Per-step critical chain is now: static vld + VALU add + MXU matmul + EUP tanh.
    h = None
    for t in range(T):
        x_proj = x_scr[pl.ds(t * B, B), :]                       # (B, H), static offset
        if t == 0:
            # state=None -> h_0 = 0, so the recurrent matmul is skipped on step 0.
            h = jnp.tanh(x_proj)
        else:
            h = jnp.tanh(x_proj
                         + jnp.dot(h, w_hh_t, preferred_element_type=jnp.float32))
        # Per-step store down the otherwise-idle vst slot (hides under next MXU/EUP).
        y_ref[pl.ds(t * B, B), :] = h

    # ---- Phase 3: deferred dense head: one (T*B, H) @ (H, LANE) matmul + one
    # unmasked lane-dense store.
    # TODO(synk): at realistic H/V, cast the matmul operands to bf16 (keeping
    # preferred_element_type=f32) and loosen test tolerances.
    out_ref[...] = (jnp.dot(y_ref[...], w_d_t_ref[...],
                            preferred_element_type=jnp.float32)
                    + b_d_ref[...])


def rnn_model_forward(inputs, params):
    """inputs: int32 (batch, num_steps).  Returns (output (T*B, vocab), state (1, B, hidden))."""
    w_ih, w_hh, b_ih, b_hh, w_d, b_d = params
    batch, num_steps = inputs.shape
    hidden, vocab = w_ih.shape

    # Glue (one-time, tiny): fold recurrent biases into the gather rows, pre-transpose
    # weights, and zero-pad the dense head to a lane-dense (128-wide) output.
    w_ihb = w_ih.T + (b_ih + b_hh)[None, :]                      # (V, H)
    w_hh_t = w_hh.T                                              # (H, H)
    lane = max(LANE, ((vocab + LANE - 1) // LANE) * LANE)
    w_d_t = jnp.pad(w_d.T, ((0, 0), (0, lane - vocab)))          # (H, lane)
    b_d_p = jnp.pad(b_d, (0, lane - vocab)).reshape(1, lane)     # (1, lane)
    # Clamp indices: they become unchecked dynamic VMEM offsets inside the kernel.
    idx = jnp.clip(inputs, 0, vocab - 1).astype(jnp.int32)       # (B, T) scalar prefetch

    grid_spec = pltpu.PrefetchScalarGridSpec(
        num_scalar_prefetch=1,           # `idx` lands in SMEM, passed to index_maps
        grid=(1,),                       # single grid step: recurrence lives in-kernel
        in_specs=[
            pl.BlockSpec((vocab, hidden), lambda i, idx_sm: (0, 0)),      # W_ih^T + b
            pl.BlockSpec((hidden, hidden), lambda i, idx_sm: (0, 0)),     # W_hh^T
            pl.BlockSpec((hidden, lane), lambda i, idx_sm: (0, 0)),       # W_dense^T (padded)
            pl.BlockSpec((1, lane), lambda i, idx_sm: (0, 0)),            # b_dense (padded)
        ],
        out_specs=[
            pl.BlockSpec((num_steps * batch, lane), lambda i, idx_sm: (0, 0)),    # logits
            pl.BlockSpec((num_steps * batch, hidden), lambda i, idx_sm: (0, 0)),  # all h_t
        ],
        scratch_shapes=[
            pltpu.VMEM((num_steps * batch, hidden), jnp.float32),   # pre-gathered x-proj
        ],
    )

    out_pad, y_all = pl.pallas_call(
        rnn_kernel,
        out_shape=(
            jax.ShapeDtypeStruct((num_steps * batch, lane), jnp.float32),
            jax.ShapeDtypeStruct((num_steps * batch, hidden), jnp.float32),
        ),
        grid_spec=grid_spec,
        compiler_params=pltpu.CompilerParams(dimension_semantics=("arbitrary",)),
    )(idx, w_ihb, w_hh_t, w_d_t, b_d_p)

    # Final hidden state = last time-step's B rows of the Y tile (row order t-major).
    state = y_all[-batch:, :][None, ...]                          # (1, B, H)
    return out_pad[:, :vocab], state


def reference_forward(inputs, params):
    """Pure-JAX reference of the same forward pass."""
    w_ih, w_hh, b_ih, b_hh, w_d, b_d = params
    x = jax.nn.one_hot(inputs.T, w_ih.shape[1], dtype=jnp.float32)   # (T, B, V)

    def step(h, x_t):
        h_new = jnp.tanh(x_t @ w_ih.T + b_ih + h @ w_hh.T + b_hh)
        return h_new, h_new

    h0 = jnp.zeros((inputs.shape[0], w_ih.shape[0]), jnp.float32)
    hT, ys = jax.lax.scan(step, h0, x)
    out = ys.reshape(-1, ys.shape[-1]) @ w_d.T + b_d
    return out, hT[None]


def init_params(key, vocab, hidden):
    """Deterministic init mimicking PyTorch's U(-1/sqrt(H), 1/sqrt(H))."""
    k = 1.0 / np.sqrt(hidden)
    ks = jax.random.split(key, 6)
    w_ih = jax.random.uniform(ks[0], (hidden, vocab), jnp.float32, -k, k)
    w_hh = jax.random.uniform(ks[1], (hidden, hidden), jnp.float32, -k, k)
    b_ih = jax.random.uniform(ks[2], (hidden,), jnp.float32, -k, k)
    b_hh = jax.random.uniform(ks[3], (hidden,), jnp.float32, -k, k)
    w_d = jax.random.uniform(ks[4], (vocab, hidden), jnp.float32, -k, k)
    b_d = jax.random.uniform(ks[5], (vocab,), jnp.float32, -k, k)
    return (w_ih, w_hh, b_ih, b_hh, w_d, b_d)


if __name__ == "__main__":
    key = jax.random.PRNGKey(0)
    pkey, ikey = jax.random.split(key)
    params = init_params(pkey, VOCAB, HIDDEN)
    inputs = jax.random.randint(ikey, (BATCH, NUM_STEPS), 0, VOCAB, dtype=jnp.int32)

    out, state = rnn_model_forward(inputs, params)
    out = jax.block_until_ready(out)
    state = jax.block_until_ready(state)

    ref_out, ref_state = reference_forward(inputs, params)
    assert out.shape == (NUM_STEPS * BATCH, VOCAB)
    assert state.shape == (1, BATCH, HIDDEN)
    np.testing.assert_allclose(np.asarray(out), np.asarray(ref_out), atol=1e-4, rtol=1e-4)
    np.testing.assert_allclose(np.asarray(state), np.asarray(ref_state), atol=1e-4, rtol=1e-4)

    print("KERNEL_OK")
</pallas_src>

<mosaic_0001>
module attributes {stable_mosaic.version = 11 : i64} {
  func.func @rnn_kernel(%arg0: i32, %arg1: memref<2x8xi32, #tpu.memory_space<smem>>, %arg2: memref<16x32xf32, #tpu.memory_space<vmem>>, %arg3: memref<32x32xf32, #tpu.memory_space<vmem>>, %arg4: memref<32x128xf32, #tpu.memory_space<vmem>>, %arg5: memref<1x128xf32, #tpu.memory_space<vmem>>, %arg6: memref<16x128xf32, #tpu.memory_space<vmem>>, %arg7: memref<16x32xf32, #tpu.memory_space<vmem>>, %arg8: memref<16x32xf32, #tpu.memory_space<vmem>>) attributes {dimension_semantics = [#tpu.dimension_semantics<arbitrary>], iteration_bounds = array<i64: 1>, scalar_prefetch = 1 : i64, scratch_operands = 1 : i64, tpu.core_type = #tpu.core_type<tc>, window_params = [{pipeline_mode = #tpu.pipeline_mode<synchronous>, transform_indices = @transform_0, window_bounds = array<i64: 16, 32>}, {pipeline_mode = #tpu.pipeline_mode<synchronous>, transform_indices = @transform_1, window_bounds = array<i64: 32, 32>}, {pipeline_mode = #tpu.pipeline_mode<synchronous>, transform_indices = @transform_2, window_bounds = array<i64: 32, 128>}, {pipeline_mode = #tpu.pipeline_mode<synchronous>, transform_indices = @transform_3, window_bounds = array<i64: 1, 128>}, {pipeline_mode = #tpu.pipeline_mode<synchronous>, transform_indices = @transform_4, window_bounds = array<i64: 16, 128>}, {pipeline_mode = #tpu.pipeline_mode<synchronous>, transform_indices = @transform_5, window_bounds = array<i64: 16, 32>}]} {
    %c0 = arith.constant 0 : index
    %c0_0 = arith.constant 0 : index
    %0 = memref.load %arg1[%c0, %c0_0] : memref<2x8xi32, #tpu.memory_space<smem>>
    %1 = arith.index_cast %0 : i32 to index
    %c0_1 = arith.constant 0 : index
    %2 = vector.load %arg2[%1, %c0_1] : memref<16x32xf32, #tpu.memory_space<vmem>>, vector<1x32xf32>
    %c0_2 = arith.constant 0 : index
    %c0_3 = arith.constant 0 : index
    %3 = vector.load %arg8[%c0_2, %c0_3] : memref<16x32xf32, #tpu.memory_space<vmem>>, vector<1x32xf32>
    tpu.vector_store %arg8[%c0_2, %c0_3], %2 {strides = array<i32>} : memref<16x32xf32, #tpu.memory_space<vmem>>, vector<1x32xf32>,
    %c1 = arith.constant 1 : index
    %c0_4 = arith.constant 0 : index
    %4 = memref.load %arg1[%c1, %c0_4] : memref<2x8xi32, #tpu.memory_space<smem>>
    %5 = arith.index_cast %4 : i32 to index
    %c0_5 = arith.constant 0 : index
    %6 = vector.load %arg2[%5, %c0_5] : memref<16x32xf32, #tpu.memory_space<vmem>>, vector<1x32xf32>
    %c1_6 = arith.constant 1 : index
    %c0_7 = arith.constant 0 : index
    %7 = vector.load %arg8[%c1_6, %c0_7] : memref<16x32xf32, #tpu.memory_space<vmem>>, vector<1x32xf32>
    tpu.vector_store %arg8[%c1_6, %c0_7], %6 {strides = array<i32>} : memref<16x32xf32, #tpu.memory_space<vmem>>, vector<1x32xf32>,
    %c0_8 = arith.constant 0 : index
    %c1_9 = arith.constant 1 : index
    %8 = memref.load %arg1[%c0_8, %c1_9] : memref<2x8xi32, #tpu.memory_space<smem>>
    %9 = arith.index_cast %8 : i32 to index
    %c0_10 = arith.constant 0 : index
    %10 = vector.load %arg2[%9, %c0_10] : memref<16x32xf32, #tpu.memory_space<vmem>>, vector<1x32xf32>
    %c2 = arith.constant 2 : index
    %c0_11 = arith.constant 0 : index
    %11 = vector.load %arg8[%c2, %c0_11] : memref<16x32xf32, #tpu.memory_space<vmem>>, vector<1x32xf32>
    tpu.vector_store %arg8[%c2, %c0_11], %10 {strides = array<i32>} : memref<16x32xf32, #tpu.memory_space<vmem>>, vector<1x32xf32>,
    %c1_12 = arith.constant 1 : index
    %c1_13 = arith.constant 1 : index
    %12 = memref.load %arg1[%c1_12, %c1_13] : memref<2x8xi32, #tpu.memory_space<smem>>
    %13 = arith.index_cast %12 : i32 to index
    %c0_14 = arith.constant 0 : index
    %14 = vector.load %arg2[%13, %c0_14] : memref<16x32xf32, #tpu.memory_space<vmem>>, vector<1x32xf32>
    %c3 = arith.constant 3 : index
    %c0_15 = arith.constant 0 : index
    %15 = vector.load %arg8[%c3, %c0_15] : memref<16x32xf32, #tpu.memory_space<vmem>>, vector<1x32xf32>
    tpu.vector_store %arg8[%c3, %c0_15], %14 {strides = array<i32>} : memref<16x32xf32, #tpu.memory_space<vmem>>, vector<1x32xf32>,
    %c0_16 = arith.constant 0 : index
    %c2_17 = arith.constant 2 : index
    %16 = memref.load %arg1[%c0_16, %c2_17] : memref<2x8xi32, #tpu.memory_space<smem>>
    %17 = arith.index_cast %16 : i32 to index
    %c0_18 = arith.constant 0 : index
    %18 = vector.load %arg2[%17, %c0_18] : memref<16x32xf32, #tpu.memory_space<vmem>>, vector<1x32xf32>
    %c4 = arith.constant 4 : index
    %c0_19 = arith.constant 0 : index
    %19 = vector.load %arg8[%c4, %c0_19] : memref<16x32xf32, #tpu.memory_space<vmem>>, vector<1x32xf32>
    tpu.vector_store %arg8[%c4, %c0_19], %18 {strides = array<i32>} : memref<16x32xf32, #tpu.memory_space<vmem>>, vector<1x32xf32>,
    %c1_20 = arith.constant 1 : index
    %c2_21 = arith.constant 2 : index
    %20 = memref.load %arg1[%c1_20, %c2_21] : memref<2x8xi32, #tpu.memory_space<smem>>
    %21 = arith.index_cast %20 : i32 to index
    %c0_22 = arith.constant 0 : index
    %22 = vector.load %arg2[%21, %c0_22] : memref<16x32xf32, #tpu.memory_space<vmem>>, vector<1x32xf32>
    %c5 = arith.constant 5 : index
    %c0_23 = arith.constant 0 : index
    %23 = vector.load %arg8[%c5, %c0_23] : memref<16x32xf32, #tpu.memory_space<vmem>>, vector<1x32xf32>
    tpu.vector_store %arg8[%c5, %c0_23], %22 {strides = array<i32>} : memref<16x32xf32, #tpu.memory_space<vmem>>, vector<1x32xf32>,
    %c0_24 = arith.constant 0 : index
    %c3_25 = arith.constant 3 : index
    %24 = memref.load %arg1[%c0_24, %c3_25] : memref<2x8xi32, #tpu.memory_space<smem>>
    %25 = arith.index_cast %24 : i32 to index
    %c0_26 = arith.constant 0 : index
    %26 = vector.load %arg2[%25, %c0_26] : memref<16x32xf32, #tpu.memory_space<vmem>>, vector<1x32xf32>
    %c6 = arith.constant 6 : index
    %c0_27 = arith.constant 0 : index
    %27 = vector.load %arg8[%c6, %c0_27] : memref<16x32xf32, #tpu.memory_space<vmem>>, vector<1x32xf32>
    tpu.vector_store %arg8[%c6, %c0_27], %26 {strides = array<i32>} : memref<16x32xf32, #tpu.memory_space<vmem>>, vector<1x32xf32>,
    %c1_28 = arith.constant 1 : index
    %c3_29 = arith.constant 3 : index
    %28 = memref.load %arg1[%c1_28, %c3_29] : memref<2x8xi32, #tpu.memory_space<smem>>
    %29 = arith.index_cast %28 : i32 to index
    %c0_30 = arith.constant 0 : index
    %30 = vector.load %arg2[%29, %c0_30] : memref<16x32xf32, #tpu.memory_space<vmem>>, vector<1x32xf32>
    %c7 = arith.constant 7 : index
    %c0_31 = arith.constant 0 : index
    %31 = vector.load %arg8[%c7, %c0_31] : memref<16x32xf32, #tpu.memory_space<vmem>>, vector<1x32xf32>
    tpu.vector_store %arg8[%c7, %c0_31], %30 {strides = array<i32>} : memref<16x32xf32, #tpu.memory_space<vmem>>, vector<1x32xf32>,
    %c0_32 = arith.constant 0 : index
    %c4_33 = arith.constant 4 : index
    %32 = memref.load %arg1[%c0_32, %c4_33] : memref<2x8xi32, #tpu.memory_space<smem>>
    %33 = arith.index_cast %32 : i32 to index
    %c0_34 = arith.constant 0 : index
    %34 = vector.load %arg2[%33, %c0_34] : memref<16x32xf32, #tpu.memory_space<vmem>>, vector<1x32xf32>
    %c8 = arith.constant 8 : index
    %c0_35 = arith.constant 0 : index
    %35 = vector.load %arg8[%c8, %c0_35] : memref<16x32xf32, #tpu.memory_space<vmem>>, vector<1x32xf32>
    tpu.vector_store %arg8[%c8, %c0_35], %34 {strides = array<i32>} : memref<16x32xf32, #tpu.memory_space<vmem>>, vector<1x32xf32>,
    %c1_36 = arith.constant 1 : index
    %c4_37 = arith.constant 4 : index
    %36 = memref.load %arg1[%c1_36, %c4_37] : memref<2x8xi32, #tpu.memory_space<smem>>
    %37 = arith.index_cast %36 : i32 to index
    %c0_38 = arith.constant 0 : index
    %38 = vector.load %arg2[%37, %c0_38] : memref<16x32xf32, #tpu.memory_space<vmem>>, vector<1x32xf32>
    %c9 = arith.constant 9 : index
    %c0_39 = arith.constant 0 : index
    %39 = vector.load %arg8[%c9, %c0_39] : memref<16x32xf32, #tpu.memory_space<vmem>>, vector<1x32xf32>
    tpu.vector_store %arg8[%c9, %c0_39], %38 {strides = array<i32>} : memref<16x32xf32, #tpu.memory_space<vmem>>, vector<1x32xf32>,
    %c0_40 = arith.constant 0 : index
    %c5_41 = arith.constant 5 : index
    %40 = memref.load %arg1[%c0_40, %c5_41] : memref<2x8xi32, #tpu.memory_space<smem>>
    %41 = arith.index_cast %40 : i32 to index
    %c0_42 = arith.constant 0 : index
    %42 = vector.load %arg2[%41, %c0_42] : memref<16x32xf32, #tpu.memory_space<vmem>>, vector<1x32xf32>
    %c10 = arith.constant 10 : index
    %c0_43 = arith.constant 0 : index
    %43 = vector.load %arg8[%c10, %c0_43] : memref<16x32xf32, #tpu.memory_space<vmem>>, vector<1x32xf32>
    tpu.vector_store %arg8[%c10, %c0_43], %42 {strides = array<i32>} : memref<16x32xf32, #tpu.memory_space<vmem>>, vector<1x32xf32>,
    %c1_44 = arith.constant 1 : index
    %c5_45 = arith.constant 5 : index
    %44 = memref.load %arg1[%c1_44, %c5_45] : memref<2x8xi32, #tpu.memory_space<smem>>
    %45 = arith.index_cast %44 : i32 to index
    %c0_46 = arith.constant 0 : index
    %46 = vector.load %arg2[%45, %c0_46] : memref<16x32xf32, #tpu.memory_space<vmem>>, vector<1x32xf32>
    %c11 = arith.constant 11 : index
    %c0_47 = arith.constant 0 : index
    %47 = vector.load %arg8[%c11, %c0_47] : memref<16x32xf32, #tpu.memory_space<vmem>>, vector<1x32xf32>
    tpu.vector_store %arg8[%c11, %c0_47], %46 {strides = array<i32>} : memref<16x32xf32, #tpu.memory_space<vmem>>, vector<1x32xf32>,
    %c0_48 = arith.constant 0 : index
    %c6_49 = arith.constant 6 : index
    %48 = memref.load %arg1[%c0_48, %c6_49] : memref<2x8xi32, #tpu.memory_space<smem>>
    %49 = arith.index_cast %48 : i32 to index
    %c0_50 = arith.constant 0 : index
    %50 = vector.load %arg2[%49, %c0_50] : memref<16x32xf32, #tpu.memory_space<vmem>>, vector<1x32xf32>
    %c12 = arith.constant 12 : index
    %c0_51 = arith.constant 0 : index
    %51 = vector.load %arg8[%c12, %c0_51] : memref<16x32xf32, #tpu.memory_space<vmem>>, vector<1x32xf32>
    tpu.vector_store %arg8[%c12, %c0_51], %50 {strides = array<i32>} : memref<16x32xf32, #tpu.memory_space<vmem>>, vector<1x32xf32>,
    %c1_52 = arith.constant 1 : index
    %c6_53 = arith.constant 6 : index
    %52 = memref.load %arg1[%c1_52, %c6_53] : memref<2x8xi32, #tpu.memory_space<smem>>
    %53 = arith.index_cast %52 : i32 to index
    %c0_54 = arith.constant 0 : index
    %54 = vector.load %arg2[%53, %c0_54] : memref<16x32xf32, #tpu.memory_space<vmem>>, vector<1x32xf32>
    %c13 = arith.constant 13 : index
    %c0_55 = arith.constant 0 : index
    %55 = vector.load %arg8[%c13, %c0_55] : memref<16x32xf32, #tpu.memory_space<vmem>>, vector<1x32xf32>
    tpu.vector_store %arg8[%c13, %c0_55], %54 {strides = array<i32>} : memref<16x32xf32, #tpu.memory_space<vmem>>, vector<1x32xf32>,
    %c0_56 = arith.constant 0 : index
    %c7_57 = arith.constant 7 : index
    %56 = memref.load %arg1[%c0_56, %c7_57] : memref<2x8xi32, #tpu.memory_space<smem>>
    %57 = arith.index_cast %56 : i32 to index
    %c0_58 = arith.constant 0 : index
    %58 = vector.load %arg2[%57, %c0_58] : memref<16x32xf32, #tpu.memory_space<vmem>>, vector<1x32xf32>
    %c14 = arith.constant 14 : index
    %c0_59 = arith.constant 0 : index
    %59 = vector.load %arg8[%c14, %c0_59] : memref<16x32xf32, #tpu.memory_space<vmem>>, vector<1x32xf32>
    tpu.vector_store %arg8[%c14, %c0_59], %58 {strides = array<i32>} : memref<16x32xf32, #tpu.memory_space<vmem>>, vector<1x32xf32>,
    %c1_60 = arith.constant 1 : index
    %c7_61 = arith.constant 7 : index
    %60 = memref.load %arg1[%c1_60, %c7_61] : memref<2x8xi32, #tpu.memory_space<smem>>
    %61 = arith.index_cast %60 : i32 to index
    %c0_62 = arith.constant 0 : index
    %62 = vector.load %arg2[%61, %c0_62] : memref<16x32xf32, #tpu.memory_space<vmem>>, vector<1x32xf32>
    %c15 = arith.constant 15 : index
    %c0_63 = arith.constant 0 : index
    %63 = vector.load %arg8[%c15, %c0_63] : memref<16x32xf32, #tpu.memory_space<vmem>>, vector<1x32xf32>
    tpu.vector_store %arg8[%c15, %c0_63], %62 {strides = array<i32>} : memref<16x32xf32, #tpu.memory_space<vmem>>, vector<1x32xf32>,
    %c0_64 = arith.constant 0 : index
    %c0_65 = arith.constant 0 : index
    %64 = vector.load %arg3[%c0_64, %c0_65] : memref<32x32xf32, #tpu.memory_space<vmem>>, vector<32x32xf32>
    %c0_66 = arith.constant 0 : index
    %c0_67 = arith.constant 0 : index
    %65 = vector.load %arg8[%c0_66, %c0_67] : memref<16x32xf32, #tpu.memory_space<vmem>>, vector<2x32xf32>
    %66 = math.tanh %65 : vector<2x32xf32>
    %c0_68 = arith.constant 0 : index
    %c0_69 = arith.constant 0 : index
    %67 = vector.load %arg7[%c0_68, %c0_69] : memref<16x32xf32, #tpu.memory_space<vmem>>, vector<2x32xf32>
    tpu.vector_store %arg7[%c0_68, %c0_69], %66 {strides = array<i32>} : memref<16x32xf32, #tpu.memory_space<vmem>>, vector<2x32xf32>,
    %c2_70 = arith.constant 2 : index
    %c0_71 = arith.constant 0 : index
    %68 = vector.load %arg8[%c2_70, %c0_71] : memref<16x32xf32, #tpu.memory_space<vmem>>, vector<2x32xf32>
    %cst = arith.constant dense<0.000000e+00> : vector<2x32xf32>
    %69 = tpu.matmul %66, %64, %cst {dimension_numbers = #tpu.dot_dimension_numbers<[1], [0], [0], [1], [0, 0, 1, 1], [], []>} : vector<2x32xf32>, vector<32x32xf32>, vector<2x32xf32> -> vector<2x32xf32>
    %70 = arith.addf %68, %69 : vector<2x32xf32>
    %71 = math.tanh %70 : vector<2x32xf32>
    %c2_72 = arith.constant 2 : index
    %c0_73 = arith.constant 0 : index
    %72 = vector.load %arg7[%c2_72, %c0_73] : memref<16x32xf32, #tpu.memory_space<vmem>>, vector<2x32xf32>
    tpu.vector_store %arg7[%c2_72, %c0_73], %71 {strides = array<i32>} : memref<16x32xf32, #tpu.memory_space<vmem>>, vector<2x32xf32>,
    %c4_74 = arith.constant 4 : index
    %c0_75 = arith.constant 0 : index
    %73 = vector.load %arg8[%c4_74, %c0_75] : memref<16x32xf32, #tpu.memory_space<vmem>>, vector<2x32xf32>
    %cst_76 = arith.constant dense<0.000000e+00> : vector<2x32xf32>
    %74 = tpu.matmul %71, %64, %cst_76 {dimension_numbers = #tpu.dot_dimension_numbers<[1], [0], [0], [1], [0, 0, 1, 1], [], []>} : vector<2x32xf32>, vector<32x32xf32>, vector<2x32xf32> -> vector<2x32xf32>
    %75 = arith.addf %73, %74 : vector<2x32xf32>
    %76 = math.tanh %75 : vector<2x32xf32>
    %c4_77 = arith.constant 4 : index
    %c0_78 = arith.constant 0 : index
    %77 = vector.load %arg7[%c4_77, %c0_78] : memref<16x32xf32, #tpu.memory_space<vmem>>, vector<2x32xf32>
    tpu.vector_store %arg7[%c4_77, %c0_78], %76 {strides = array<i32>} : memref<16x32xf32, #tpu.memory_space<vmem>>, vector<2x32xf32>,
    %c6_79 = arith.constant 6 : index
    %c0_80 = arith.constant 0 : index
    %78 = vector.load %arg8[%c6_79, %c0_80] : memref<16x32xf32, #tpu.memory_space<vmem>>, vector<2x32xf32>
    %cst_81 = arith.constant dense<0.000000e+00> : vector<2x32xf32>
    %79 = tpu.matmul %76, %64, %cst_81 {dimension_numbers = #tpu.dot_dimension_numbers<[1], [0], [0], [1], [0, 0, 1, 1], [], []>} : vector<2x32xf32>, vector<32x32xf32>, vector<2x32xf32> -> vector<2x32xf32>
    %80 = arith.addf %78, %79 : vector<2x32xf32>
    %81 = math.tanh %80 : vector<2x32xf32>
    %c6_82 = arith.constant 6 : index
    %c0_83 = arith.constant 0 : index
    %82 = vector.load %arg7[%c6_82, %c0_83] : memref<16x32xf32, #tpu.memory_space<vmem>>, vector<2x32xf32>
    tpu.vector_store %arg7[%c6_82, %c0_83], %81 {strides = array<i32>} : memref<16x32xf32, #tpu.memory_space<vmem>>, vector<2x32xf32>,
    %c8_84 = arith.constant 8 : index
    %c0_85 = arith.constant 0 : index
    %83 = vector.load %arg8[%c8_84, %c0_85] : memref<16x32xf32, #tpu.memory_space<vmem>>, vector<2x32xf32>
    %cst_86 = arith.constant dense<0.000000e+00> : vector<2x32xf32>
    %84 = tpu.matmul %81, %64, %cst_86 {dimension_numbers = #tpu.dot_dimension_numbers<[1], [0], [0], [1], [0, 0, 1, 1], [], []>} : vector<2x32xf32>, vector<32x32xf32>, vector<2x32xf32> -> vector<2x32xf32>
    %85 = arith.addf %83, %84 : vector<2x32xf32>
    %86 = math.tanh %85 : vector<2x32xf32>
    %c8_87 = arith.constant 8 : index
    %c0_88 = arith.constant 0 : index
    %87 = vector.load %arg7[%c8_87, %c0_88] : memref<16x32xf32, #tpu.memory_space<vmem>>, vector<2x32xf32>
    tpu.vector_store %arg7[%c8_87, %c0_88], %86 {strides = array<i32>} : memref<16x32xf32, #tpu.memory_space<vmem>>, vector<2x32xf32>,
    %c10_89 = arith.constant 10 : index
    %c0_90 = arith.constant 0 : index
    %88 = vector.load %arg8[%c10_89, %c0_90] : memref<16x32xf32, #tpu.memory_space<vmem>>, vector<2x32xf32>
    %cst_91 = arith.constant dense<0.000000e+00> : vector<2x32xf32>
    %89 = tpu.matmul %86, %64, %cst_91 {dimension_numbers = #tpu.dot_dimension_numbers<[1], [0], [0], [1], [0, 0, 1, 1], [], []>} : vector<2x32xf32>, vector<32x32xf32>, vector<2x32xf32> -> vector<2x32xf32>
    %90 = arith.addf %88, %89 : vector<2x32xf32>
    %91 = math.tanh %90 : vector<2x32xf32>
    %c10_92 = arith.constant 10 : index
    %c0_93 = arith.constant 0 : index
    %92 = vector.load %arg7[%c10_92, %c0_93] : memref<16x32xf32, #tpu.memory_space<vmem>>, vector<2x32xf32>
    tpu.vector_store %arg7[%c10_92, %c0_93], %91 {strides = array<i32>} : memref<16x32xf32, #tpu.memory_space<vmem>>, vector<2x32xf32>,
    %c12_94 = arith.constant 12 : index
    %c0_95 = arith.constant 0 : index
    %93 = vector.load %arg8[%c12_94, %c0_95] : memref<16x32xf32, #tpu.memory_space<vmem>>, vector<2x32xf32>
    %cst_96 = arith.constant dense<0.000000e+00> : vector<2x32xf32>
    %94 = tpu.matmul %91, %64, %cst_96 {dimension_numbers = #tpu.dot_dimension_numbers<[1], [0], [0], [1], [0, 0, 1, 1], [], []>} : vector<2x32xf32>, vector<32x32xf32>, vector<2x32xf32> -> vector<2x32xf32>
    %95 = arith.addf %93, %94 : vector<2x32xf32>
    %96 = math.tanh %95 : vector<2x32xf32>
    %c12_97 = arith.constant 12 : index
    %c0_98 = arith.constant 0 : index
    %97 = vector.load %arg7[%c12_97, %c0_98] : memref<16x32xf32, #tpu.memory_space<vmem>>, vector<2x32xf32>
    tpu.vector_store %arg7[%c12_97, %c0_98], %96 {strides = array<i32>} : memref<16x32xf32, #tpu.memory_space<vmem>>, vector<2x32xf32>,
    %c14_99 = arith.constant 14 : index
    %c0_100 = arith.constant 0 : index
    %98 = vector.load %arg8[%c14_99, %c0_100] : memref<16x32xf32, #tpu.memory_space<vmem>>, vector<2x32xf32>
    %cst_101 = arith.constant dense<0.000000e+00> : vector<2x32xf32>
    %99 = tpu.matmul %96, %64, %cst_101 {dimension_numbers = #tpu.dot_dimension_numbers<[1], [0], [0], [1], [0, 0, 1, 1], [], []>} : vector<2x32xf32>, vector<32x32xf32>, vector<2x32xf32> -> vector<2x32xf32>
    %100 = arith.addf %98, %99 : vector<2x32xf32>
    %101 = math.tanh %100 : vector<2x32xf32>
    %c14_102 = arith.constant 14 : index
    %c0_103 = arith.constant 0 : index
    %102 = vector.load %arg7[%c14_102, %c0_103] : memref<16x32xf32, #tpu.memory_space<vmem>>, vector<2x32xf32>
    tpu.vector_store %arg7[%c14_102, %c0_103], %101 {strides = array<i32>} : memref<16x32xf32, #tpu.memory_space<vmem>>, vector<2x32xf32>,
    %c0_104 = arith.constant 0 : index
    %c0_105 = arith.constant 0 : index
    %103 = vector.load %arg7[%c0_104, %c0_105] : memref<16x32xf32, #tpu.memory_space<vmem>>, vector<16x32xf32>
    %c0_106 = arith.constant 0 : index
    %c0_107 = arith.constant 0 : index
    %104 = vector.load %arg4[%c0_106, %c0_107] : memref<32x128xf32, #tpu.memory_space<vmem>>, vector<32x128xf32>
    %cst_108 = arith.constant dense<0.000000e+00> : vector<16x128xf32>
    %105 = tpu.matmul %103, %104, %cst_108 {dimension_numbers = #tpu.dot_dimension_numbers<[1], [0], [0], [1], [0, 0, 1, 1], [], []>} : vector<16x32xf32>, vector<32x128xf32>, vector<16x128xf32> -> vector<16x128xf32>
    %c0_109 = arith.constant 0 : index
    %c0_110 = arith.constant 0 : index
    %106 = vector.load %arg5[%c0_109, %c0_110] : memref<1x128xf32, #tpu.memory_space<vmem>>, vector<1x128xf32>
    %107 = vector.broadcast %106 : vector<1x128xf32> to vector<16x128xf32>
    %108 = arith.addf %105, %107 : vector<16x128xf32>
    %c0_111 = arith.constant 0 : index
    %c0_112 = arith.constant 0 : index
    %109 = vector.load %arg6[%c0_111, %c0_112] : memref<16x128xf32, #tpu.memory_space<vmem>>, vector<16x128xf32>
    tpu.vector_store %arg6[%c0_111, %c0_112], %108 {strides = array<i32>} : memref<16x128xf32, #tpu.memory_space<vmem>>, vector<16x128xf32>,
    return
  }
  func.func @transform_0(%arg0: i32, %arg1: memref<2x8xi32, #tpu.memory_space<smem>>) -> (i32, i32) {
    %c0_i32 = arith.constant 0 : i32
    %c0_i32_0 = arith.constant 0 : i32
    %c0_i32_1 = arith.constant 0 : i32
    return %c0_i32, %c0_i32_0 : i32, i32
  }
  func.func @transform_1(%arg0: i32, %arg1: memref<2x8xi32, #tpu.memory_space<smem>>) -> (i32, i32) {
    %c0_i32 = arith.constant 0 : i32
    %c0_i32_0 = arith.constant 0 : i32
    %c0_i32_1 = arith.constant 0 : i32
    return %c0_i32, %c0_i32_0 : i32, i32
  }
  func.func @transform_2(%arg0: i32, %arg1: memref<2x8xi32, #tpu.memory_space<smem>>) -> (i32, i32) {
    %c0_i32 = arith.constant 0 : i32
    %c0_i32_0 = arith.constant 0 : i32
    %c0_i32_1 = arith.constant 0 : i32
    return %c0_i32, %c0_i32_0 : i32, i32
  }
  func.func @transform_3(%arg0: i32, %arg1: memref<2x8xi32, #tpu.memory_space<smem>>) -> (i32, i32) {
    %c0_i32 = arith.constant 0 : i32
    %c0_i32_0 = arith.constant 0 : i32
    %c0_i32_1 = arith.constant 0 : i32
    return %c0_i32, %c0_i32_0 : i32, i32
  }
  func.func @transform_4(%arg0: i32, %arg1: memref<2x8xi32, #tpu.memory_space<smem>>) -> (i32, i32) {
    %c0_i32 = arith.constant 0 : i32
    %c0_i32_0 = arith.constant 0 : i32
    %c0_i32_1 = arith.constant 0 : i32
    return %c0_i32, %c0_i32_0 : i32, i32
  }
  func.func @transform_5(%arg0: i32, %arg1: memref<2x8xi32, #tpu.memory_space<smem>>) -> (i32, i32) {
    %c0_i32 = arith.constant 0 : i32
    %c0_i32_0 = arith.constant 0 : i32
    %c0_i32_1 = arith.constant 0 : i32
    return %c0_i32, %c0_i32_0 : i32, i32
  }
}

</mosaic_0001>

<bundles_post_ra>
// kernel: tpu_custom_call.1
= control target key start
LH: loop header
LB: loop body
LE: loop exit
PB: predicated region body
PF: predicated region fallthrough
CT: control target
= control target key end

     0   :  { %s626_s24 = smov [#allocation4]   ;;  %s738_s0 = inlined_call_operand.hbm [shape: s32[2,8], index: 0, kind: input, shape index: {}]   ;;  %s739_s1 = inlined_call_operand.hbm [shape: f32[16,32], index: 1, kind: input, shape index: {}]   ;;  %s740_s2 = inlined_call_operand.hbm [shape: f32[32,32], index: 2, kind: input, shape index: {}]   ;;  %s741_s3 = inlined_call_operand.hbm [shape: f32[32,128], index: 3, kind: input, shape index: {}]   ;;  %s742_s4 = inlined_call_operand.vmem [shape: f32[1,128], index: 4, kind: input, shape index: {}]   ;;  %s743_s5 = inlined_call_operand.hbm [shape: f32[16,128], index: 5, kind: output, shape index: {0}]   ;;  %s744_s6 = inlined_call_operand.hbm [shape: f32[16,32], index: 6, kind: output, shape index: {1}]  }
   0x1   :  { %s13_s23 = sshll.u32 %s738_s0, 4  ;;  %s14_s23 = int_to_ptr.hbm [resolvable:$true] %s13_s23 }
   0x2   :  { %16 = dma.hbm_to_smem %s14_s23, 32, %s626_s24, [#allocation3] }
   0x3   :  { %616 = dma.done.wait [#allocation3], 32 }
   0x4   :  { %617 = vsyncadd [#allocation3], 4294967264 }
   0x5   :  { %19 = sfence }
   0x6   :  { %20 = vsyncpa [#allocation6], 0 }
   0x7   :  { %21 = vsyncpa [#allocation9], 0 }
   0x8   :  { %22 = vsyncpa [#allocation7], 0 }
   0x9   :  { %23 = vsyncpa [#allocation13], 0  ;;  %s41_s27 = sshll.u32 %s740_s2, 4  ;;  %s627_s28 = smov [#allocation8]   ;;  %s42_s27 = int_to_ptr.hbm [resolvable:$true] %s41_s27 }
   0xa   :  { %s43_s29 = sshll.u32 %s627_s28, 4  ;;  %s28_s7 = sshll.u32 %s739_s1, 4  ;;  %s44_s29 = int_to_ptr.vmem [resolvable:$true] %s43_s29  ;;  %s29_s7 = int_to_ptr.hbm [resolvable:$true] %s28_s7 }
   0xb   :  { %s628_s8 = smov 128   ;;  %s629_s9 = smov 8  }
   0xc   :  { %49 = dma.hbm_to_vmem [thread:$0]  %s42_s27, 512, %s44_s29, [#allocation9], %s628_s8, %s628_s8, %s629_s9  }
   0xd   :  { %s630_s10 = smov [#allocation5]   ;;  %s54_s2 = sshll.u32 %s741_s3, 4  ;;  %s55_s2 = int_to_ptr.hbm [resolvable:$true] %s54_s2 }
   0xe   :  { %s30_s11 = sshll.u32 %s630_s10, 4  ;;  %s631_s1 = smov [#allocation10]   ;;  %s31_s11 = int_to_ptr.vmem [resolvable:$true] %s30_s11 }
   0xf   :  { %36 = dma.hbm_to_vmem [thread:$0]  %s29_s7, 256, %s31_s11, [#allocation6], %s628_s8, %s628_s8, %s629_s9  }
  0x10   :  { %s56_s14 = sshll.u32 %s631_s1, 4  ;;  %s57_s14 = int_to_ptr.vmem [resolvable:$true] %s56_s14 }
  0x11   :  { %62 = dma.hbm_to_vmem [thread:$0]  %s55_s2, 512, %s57_s14, [#allocation9], %s628_s8, %s628_s8, %s629_s9  }
  0x12   :  { %618 = dma.done.wait [#allocation6], 256  }
  0x13   :  { %619 = vsyncadd [#allocation6], 4294967040 }
  0x14   :  { %620 = dma.done.wait [#allocation9], 1024  }
  0x15   :  { %621 = vsyncadd [#allocation9], 4294966272  ;;  %s77_s15 = sld [smem:[#allocation4]]  ;;  %vm80_vm0 = vcmask 253952   ;;  %v145_v0 = vld [vmem:[#allocation8 + $0x18] sm:$0xff]  ;;  %v144_v1 = vld [vmem:[#allocation8 + $0x10] sm:$0xff] }
  0x16   :  { %s435_s16 = sld [smem:[#allocation4 + $0x80]]  ;;  %167 = vmatpush.msra.mxu0 %v145_v0  ;;  %194 = vmatpush.msra.mxu1 %v145_v0  ;;  %v143_v3 = vld [vmem:[#allocation8 + $0x8] sm:$0xff]  ;;  %v142_v6 = vld [vmem:[#allocation8] sm:$0xff]  ;;  %vm151_vm1 = vcmask 261120   ;;  %vm148_vm2 = vcmask 254976   ;;  %v345_v22 = vld [vmem:[#allocation10 + $0x18] sm:$0xff] }
  0x17   :  { %s436_s3 = sld [smem:[#allocation4 + $0x1]]  ;;  %221 = vmatpush.msra.mxu2 %v145_v0  ;;  %248 = vmatpush.msra.mxu3 %v145_v0  ;;  %v344_v23 = vld [vmem:[#allocation10 + $0x10] sm:$0xff]  ;;  %v343_v24 = vld [vmem:[#allocation10 + $0x8] sm:$0xff]  ;;  %v342_v25 = vld [vmem:[#allocation10] sm:$0xff] }
  0x18   :  { %s437_s17 = sld [smem:[#allocation4 + $0x81]]  ;;  %168 = vmatpush.msra.mxu0 %v144_v1  ;;  %195 = vmatpush.msra.mxu1 %v144_v1  ;;  %v467_v38 = vld [vmem:[%s742_s4] ss:$0 sm:$0xff] }
  0x19   :  { %222 = vmatpush.msra.mxu2 %v144_v1  ;;  %249 = vmatpush.msra.mxu3 %v144_v1  ;;  %s438_s22 = sld [smem:[#allocation4 + $0x2]] }
  0x1a   :  { %169 = vmatpush.msra.mxu0 %v143_v3  ;;  %196 = vmatpush.msra.mxu1 %v143_v3  ;;  %s439_s23 = sld [smem:[#allocation4 + $0x82]] }
  0x1b   :  { %s78_s18 = scalar_lea.vmem [#allocation5], %s77_s15  ;;  %223 = vmatpush.msra.mxu2 %v143_v3  ;;  %250 = vmatpush.msra.mxu3 %v143_v3  ;;  %s440_s26 = sld [smem:[#allocation4 + $0x3]] }
  0x1c   :  { %v79_v2 = vld [vmem:[%s78_s18] sm:$0x1]  ;;  %s83_s19 = scalar_lea.vmem [#allocation5], %s435_s16  ;;  %170 = vmatpush.msra.mxu0 %v142_v6  ;;  %197 = vmatpush.msra.mxu1 %v142_v6  ;;  %s441_s27 = sld [smem:[#allocation4 + $0x83]] }
  0x1d   :  { %81 = vst.msk [vmem:[#allocation2] sm:$0x1] %vm80_vm0, %v79_v2  ;;  %v84_v4 = vld [vmem:[%s83_s19] sm:$0x1]  ;;  %s87_s20 = scalar_lea.vmem [#allocation5], %s436_s3  ;;  %224 = vmatpush.msra.mxu2 %v142_v6  ;;  %251 = vmatpush.msra.mxu3 %v142_v6  ;;  %s442_s30 = sld [smem:[#allocation4 + $0x4]] }
  0x1e   :  { %85 = vst.msk [vmem:[#allocation2 + $0x1] sm:$0x1] %vm80_vm0, %v84_v4  ;;  %v88_v5 = vld [vmem:[%s87_s20] sm:$0x1]  ;;  %s91_s21 = scalar_lea.vmem [#allocation5], %s437_s17  ;;  %275 = vmatpush.msrb.mxu0 %v145_v0  ;;  %302 = vmatpush.msrb.mxu1 %v145_v0  ;;  %s443_s0 = sld [smem:[#allocation4 + $0x84]] }
  0x1f   :  { %89 = vst.msk [vmem:[#allocation2 + $0x2] sm:$0x1] %vm80_vm0, %v88_v5  ;;  %v92_v7 = vld [vmem:[%s91_s21] sm:$0x1]  ;;  %329 = vmatpush.msrb.mxu2 %v145_v0  ;;  %s95_s24 = scalar_lea.vmem [#allocation5], %s438_s22  ;;  %368 = vmatpush.msrb.mxu3 %v345_v22  ;;  %s444_s11 = sld [smem:[#allocation4 + $0x5]] }
  0x20   :  { %93 = vst.msk [vmem:[#allocation2 + $0x3] sm:$0x1] %vm80_vm0, %v92_v7  ;;  %276 = vmatpush.msrb.mxu0 %v144_v1  ;;  %303 = vmatpush.msrb.mxu1 %v144_v1  ;;  %v96_v10 = vld [vmem:[%s95_s24] sm:$0x1]  ;;  %s99_s25 = scalar_lea.vmem [#allocation5], %s439_s23  ;;  %s445_s12 = sld [smem:[#allocation4 + $0x85]] }
  0x21   :  { %330 = vmatpush.msrb.mxu2 %v144_v1  ;;  %v100_v11 = vld [vmem:[%s99_s25] sm:$0x1]  ;;  %97 = vst.msk [vmem:[#allocation2 + $0x4] sm:$0x1] %vm80_vm0, %v96_v10  ;;  %s103_s28 = scalar_lea.vmem [#allocation5], %s440_s26  ;;  %369 = vmatpush.msrb.mxu3 %v344_v23  ;;  %s446_s15 = sld [smem:[#allocation4 + $0x6]] }
  0x22   :  { %277 = vmatpush.msrb.mxu0 %v143_v3  ;;  %304 = vmatpush.msrb.mxu1 %v143_v3  ;;  %101 = vst.msk [vmem:[#allocation2 + $0x5] sm:$0x1] %vm80_vm0, %v100_v11  ;;  %v104_v16 = vld [vmem:[%s103_s28] sm:$0x1]  ;;  %s107_s29 = scalar_lea.vmem [#allocation5], %s441_s27  ;;  %s447_s16 = sld [smem:[#allocation4 + $0x86]] }
  0x23   :  { %331 = vmatpush.msrb.mxu2 %v143_v3  ;;  %v108_v17 = vld [vmem:[%s107_s29] sm:$0x1]  ;;  %105 = vst.msk [vmem:[#allocation2 + $0x6] sm:$0x1] %vm80_vm0, %v104_v16  ;;  %370 = vmatpush.msrb.mxu3 %v343_v24  ;;  %s111_s7 = scalar_lea.vmem [#allocation5], %s442_s30  ;;  %s448_s4 = sld [smem:[#allocation4 + $0x7]] }
  0x24   :  { %278 = vmatpush.msrb.mxu0 %v142_v6  ;;  %305 = vmatpush.msrb.mxu1 %v142_v6  ;;  %109 = vst.msk [vmem:[#allocation2 + $0x7] sm:$0x1] %vm80_vm0, %v108_v17  ;;  %v112_v26 = vld [vmem:[%s111_s7] sm:$0x1]  ;;  %s115_s10 = scalar_lea.vmem [#allocation5], %s443_s0  ;;  %s449_s18 = sld [smem:[#allocation4 + $0x87]] }
  0x25   :  { %v146_v8 = vld [vmem:[#allocation2] sm:$0x3]  ;;  %332 = vmatpush.msrb.mxu2 %v142_v6  ;;  %371 = vmatpush.msrb.mxu3 %v342_v25  ;;  %113 = vst.msk [vmem:[#allocation2 + $0x8] sm:$0x1] %vm80_vm0, %v112_v26  ;;  %s119_s13 = scalar_lea.vmem [#allocation5], %s444_s11  ;;  %s632_s21 = smov [#allocation12]  }
  0x26   :  { %468 = vtanh.f32 %v146_v8  ;;  %v116_v27 = vld [vmem:[%s115_s10] sm:$0x1]  ;;  %s123_s2 = scalar_lea.vmem [#allocation5], %s445_s12  ;;  %s398_s22 = sshll.u32 %s632_s21, 4  ;;  %s399_s22 = int_to_ptr.vmem [resolvable:$true] %s398_s22 }
  0x27   :  { %v150_v12 = vld [vmem:[#allocation2 + $0x2] sm:$0x3]  ;;  %117 = vst.msk [vmem:[#allocation2 + $0x9] sm:$0x1] %vm80_vm0, %v116_v27  ;;  %v120_v33 = vld [vmem:[%s119_s13] sm:$0x1] }
  0x28   :  { %v124_v34 = vld [vmem:[%s123_s2] sm:$0x1]  ;;  %121 = vst.msk [vmem:[#allocation2 + $0xa] sm:$0x1] %vm80_vm0, %v120_v33  ;;  %s127_s3 = scalar_lea.vmem [#allocation5], %s446_s15  ;;  %s131_s17 = scalar_lea.vmem [#allocation5], %s447_s16 }
  0x29   :  { %v178_v18 = vld [vmem:[#allocation2 + $0x4] sm:$0x3]  ;;  %125 = vst.msk [vmem:[#allocation2 + $0xb] sm:$0x1] %vm80_vm0, %v124_v34  ;;  %v128_v42 = vld [vmem:[%s127_s3] sm:$0x1] }
  0x2a   :  { %v132_v43 = vld [vmem:[%s131_s17] sm:$0x1]  ;;  %129 = vst.msk [vmem:[#allocation2 + $0xc] sm:$0x1] %vm80_vm0, %v128_v42  ;;  %s135_s19 = scalar_lea.vmem [#allocation5], %s448_s4  ;;  %s139_s20 = scalar_lea.vmem [#allocation5], %s449_s18 }
  0x2b   :  { %v205_v28 = vld [vmem:[#allocation2 + $0x6] sm:$0x3]  ;;  %133 = vst.msk [vmem:[#allocation2 + $0xd] sm:$0x1] %vm80_vm0, %v132_v43  ;;  %v136_v48 = vld [vmem:[%s135_s19] sm:$0x1] }
  0x2c   :  { %v469_v9 = vpop.eup %468  ;;  %v140_v49 = vld [vmem:[%s139_s20] sm:$0x1]  ;;  %137 = vst.msk [vmem:[#allocation2 + $0xe] sm:$0x1] %vm80_vm0, %v136_v48  ;;  %s400_s25 = sshll.u32 %s744_s6, 4  ;;  %s633_s26 = smov [#allocation11]   ;;  %s401_s25 = int_to_ptr.hbm [resolvable:$true] %s400_s25 }
  0x2d   :  { %149 = vst.msk [vmem:[#allocation12] sm:$0x3] %vm148_vm2, %v469_v9  ;;  %450 = vmatmul.msk.f32.vlgmr.msra.gmra.mxu0 %vm151_vm1, %v469_v9  ;;  %s385_s27 = sshll.u32 %s633_s26, 4  ;;  %s387_s30 = sshll.u32 %s743_s5, 4  ;;  %s386_s27 = int_to_ptr.vmem [resolvable:$true] %s385_s27  ;;  %s388_s30 = int_to_ptr.hbm [resolvable:$true] %s387_s30 }
  0x2e   :  { %v232_v35 = vld [vmem:[#allocation2 + $0x8] sm:$0x3]  ;;  %141 = vst.msk [vmem:[#allocation2 + $0xf] sm:$0x1] %vm80_vm0, %v140_v49 }
  0x30   :  { %v259_v44 = vld [vmem:[#allocation2 + $0xa] sm:$0x3] }
  0x32   :  { %v286_v50 = vld [vmem:[#allocation2 + $0xc] sm:$0x3] }
  0x35   :  { %v313_v54 = vld [vmem:[#allocation2 + $0xe] sm:$0x3] }
  0xaa   :  { %v172_v13 = vpop.f32.mrf.mxu0 }
  0xab   :  { %v175_v14 = vadd.f32 %v172_v13, %v150_v12 }
  0xad   :  { %470 = vtanh.f32 %v175_v14 }
  0xb3   :  { %v471_v15 = vpop.eup %470 }
  0xb4   :  { %177 = vst.msk [vmem:[#allocation12 + $0x2] sm:$0x3] %vm148_vm2, %v471_v15  ;;  %451 = vmatmul.msk.f32.vlgmr.msra.gmra.mxu1 %vm151_vm1, %v471_v15 }
 0x131   :  { %v199_v19 = vpop.f32.mrf.mxu1 }
 0x132   :  { %v202_v20 = vadd.f32 %v199_v19, %v178_v18 }
 0x134   :  { %472 = vtanh.f32 %v202_v20 }
 0x13a   :  { %v473_v21 = vpop.eup %472 }
 0x13b   :  { %204 = vst.msk [vmem:[#allocation12 + $0x4] sm:$0x3] %vm148_vm2, %v473_v21  ;;  %452 = vmatmul.msk.f32.vlgmr.msra.gmra.mxu2 %vm151_vm1, %v473_v21 }
 0x1be   :  { %v226_v29 = vpop.f32.mrf.mxu2 }
 0x1bf   :  { %v229_v30 = vadd.f32 %v226_v29, %v205_v28 }
 0x1c1   :  { %474 = vtanh.f32 %v229_v30 }
 0x1c7   :  { %v475_v31 = vpop.eup %474 }
 0x1c8   :  { %231 = vst.msk [vmem:[#allocation12 + $0x6] sm:$0x3] %vm148_vm2, %v475_v31  ;;  %453 = vmatmul.msk.f32.vlgmr.msra.gmra.mxu3 %vm151_vm1, %v475_v31 }
 0x1cf   :  { %v340_v32 = vld [vmem:[#allocation12] sm:$0xff] }
 0x1d0   :  { %457 = vmatmul.msk.f32.vlgmr.msrb.gmra.mxu3 %vm151_vm1, %v340_v32 }
 0x24b   :  { %v253_v36 = vpop.f32.mrf.mxu3 }
 0x24c   :  { %v256_v37 = vadd.f32 %v253_v36, %v232_v35 }
 0x24e   :  { %476 = vtanh.f32 %v256_v37 }
 0x253   :  { %v373_v39 = vpop.f32.mrf.mxu3 }
 0x254   :  { %v477_v40 = vpop.eup %476  ;;  %v374_v41 = vadd.f32 %v467_v38, %v373_v39 }
 0x255   :  { %258 = vst.msk [vmem:[#allocation12 + $0x8] sm:$0x3] %vm148_vm2, %v477_v40  ;;  %454 = vmatmul.msk.f32.vlgmr.msrb.gmra.mxu0 %vm151_vm1, %v477_v40 }
 0x256   :  { %379 = vst [vmem:[#allocation11] sm:$0xff] %v374_v41 }
 0x2d2   :  { %v280_v45 = vpop.f32.mrf.mxu0 }
 0x2d3   :  { %v283_v46 = vadd.f32 %v280_v45, %v259_v44 }
 0x2d5   :  { %478 = vtanh.f32 %v283_v46 }
 0x2db   :  { %v479_v47 = vpop.eup %478 }
 0x2dc   :  { %285 = vst.msk [vmem:[#allocation12 + $0xa] sm:$0x3] %vm148_vm2, %v479_v47  ;;  %455 = vmatmul.msk.f32.vlgmr.msrb.gmra.mxu1 %vm151_vm1, %v479_v47 }
 0x359   :  { %v307_v51 = vpop.f32.mrf.mxu1 }
 0x35a   :  { %v310_v52 = vadd.f32 %v307_v51, %v286_v50 }
 0x35c   :  { %480 = vtanh.f32 %v310_v52 }
 0x362   :  { %v481_v53 = vpop.eup %480 }
 0x363   :  { %312 = vst.msk [vmem:[#allocation12 + $0xc] sm:$0x3] %vm148_vm2, %v481_v53  ;;  %456 = vmatmul.msk.f32.vlgmr.msrb.gmra.mxu2 %vm151_vm1, %v481_v53 }
 0x3e6   :  { %v334_v55 = vpop.f32.mrf.mxu2 }
 0x3e7   :  { %v337_v56 = vadd.f32 %v334_v55, %v313_v54 }
 0x3e9   :  { %482 = vtanh.f32 %v337_v56 }
 0x3ef   :  { %v483_v57 = vpop.eup %482 }
 0x3f0   :  { %339 = vst.msk [vmem:[#allocation12 + $0xe] sm:$0x3] %vm148_vm2, %v483_v57 }
 0x3f1   :  { %406 = dma.vmem_to_hbm [thread:$0]  %s399_s22, 256, %s401_s25, [#allocation13], %s628_s8, %s628_s8, %s629_s9  }
 0x3f7   :  { %v341_v58 = vld [vmem:[#allocation12 + $0x8] sm:$0xff] }
 0x3f8   :  { %458 = vmatmul.msk.f32.gmra.mxu3 %vm151_vm1, %v341_v58 }
 0x47b   :  { %v376_v59 = vpop.f32.mrf.mxu3 }
 0x47c   :  { %v377_v60 = vadd.f32 %v467_v38, %v376_v59 }
 0x47e   :  { %380 = vst [vmem:[#allocation11 + $0x8] sm:$0xff] %v377_v60 }
 0x47f   :  { %393 = dma.vmem_to_hbm [thread:$0]  %s386_s27, 256, %s388_s30, [#allocation7], %s628_s8, %s628_s8, %s629_s9  }
 0x480   :  { %622 = dma.done.wait [#allocation7], 256  }
 0x481   :  { %623 = vsyncadd [#allocation7], 4294967040 }
 0x482   :  { %624 = dma.done.wait [#allocation13], 256  }
 0x483   :  { %625 = vsyncadd [#allocation13], 4294967040 }
 0x484   :  { %415 = vsyncpa [#allocation6], 1 }
 0x485   :  { %416 = vsyncpa [#allocation9], 1 }
 0x486   :  { %417 = vsyncpa [#allocation7], 1 }
 0x487   :  { %418 = vsyncpa [#allocation13], 1 }

</bundles_post_ra>
